<compile_context>
chip_gen: v7x
topology: tpu7x:2x2x1
jax: 0.10.0
libtpu: 0.0.40
codegen_flags: <defaults>
</compile_context>

<pallas_src>
import functools

import jax
import jax.numpy as jnp
from jax.experimental import pallas as pl
from jax.experimental.pallas import tpu as pltpu


def _round_up(x, m):
    return ((x + m - 1) // m) * m


def mlp_readout_kernel(x_ref, w0_ref, b0_ref, w1_ref, b1_ref, w2_ref, b2_ref,
                       o_ref, *, chunk_rows):
    rows = x_ref.shape[0]
    # Process the row tile in sub-chunks to keep lane-padded f32 intermediates
    # small even when the DMA tile is large (v7x amortization).
    if rows > chunk_rows and rows % chunk_rows == 0:
        chunk = chunk_rows
    else:
        chunk = rows
    n_chunks = rows // chunk

    # Weights/biases are tiny: read once per grid step, reuse for every chunk.
    w0 = w0_ref[...]
    w1 = w1_ref[...]
    w2 = w2_ref[...]
    b0 = b0_ref[...].astype(jnp.float32)
    b1 = b1_ref[...].astype(jnp.float32)
    b2 = b2_ref[...].astype(jnp.float32)

    def compute(xs):
        # layer 0: Linear + ReLU  (MXU, f32 accumulation)
        y = jnp.dot(xs, w0, preferred_element_type=jnp.float32)
        y = jnp.maximum(y + b0, 0.0)
        # layer 1: Linear + ReLU
        y = jnp.dot(y.astype(w1.dtype), w1, preferred_element_type=jnp.float32)
        y = jnp.maximum(y + b1, 0.0)
        # layer 2 (final): Linear, no activation
        y = jnp.dot(y.astype(w2.dtype), w2, preferred_element_type=jnp.float32)
        return y + b2

    if n_chunks == 1:
        o_ref[...] = compute(x_ref[...]).astype(o_ref.dtype)
    else:
        def body(c, carry):
            r0 = pl.multiple_of(c * chunk, chunk)
            xs = x_ref[pl.ds(r0, chunk), :]
            o_ref[pl.ds(r0, chunk), :] = compute(xs).astype(o_ref.dtype)
            return carry
        jax.lax.fori_loop(0, n_chunks, body, None)


def _choose_row_tile(n, target):
    """Row tile: multiple of 8 (or exactly n); >=2 grid steps when n is big."""
    target = max(8, (int(target) // 8) * 8)          # force multiple of 8
    if n > target:
        return target                                # cdiv grid, partial last block masked
    if n >= 2048:
        # A single tile would cover everything: split in two so the "parallel"
        # row axis gives both v7x TensorCores work.
        half = _round_up(pl.cdiv(n, 2), 8)
        if half < n:
            return half
    return n                                         # single full-array block


def mlp_readout(x, params, *, tile_n=8192, chunk_rows=1024):
    """params = [(w0, b0), (w1, b1), (w2, b2)] with w: [in, out], b: [1, out]."""
    (w0, b0), (w1, b1), (w2, b2) = params
    n, in_dim = x.shape
    out_dim = w2.shape[1]

    tile = _choose_row_tile(n, tile_n)
    chunk_rows = max(8, (int(chunk_rows) // 8) * 8)
    grid = (pl.cdiv(n, tile),)                       # no x padding; last block masked

    row_map = lambda i: (i, 0)                       # stream x / output row tiles
    const_map = lambda i: (0, 0)                     # weights/biases: VMEM-resident

    kernel = functools.partial(mlp_readout_kernel, chunk_rows=chunk_rows)

    return pl.pallas_call(
        kernel,
        out_shape=jax.ShapeDtypeStruct((n, out_dim), x.dtype),
        grid=grid,
        in_specs=[
            pl.BlockSpec((tile, in_dim), row_map),
            pl.BlockSpec(w0.shape, const_map),
            pl.BlockSpec(b0.shape, const_map),
            pl.BlockSpec(w1.shape, const_map),
            pl.BlockSpec(b1.shape, const_map),
            pl.BlockSpec(w2.shape, const_map),
            pl.BlockSpec(b2.shape, const_map),
        ],
        out_specs=pl.BlockSpec((tile, out_dim), row_map),
        compiler_params=pltpu.CompilerParams(
            dimension_semantics=("parallel",),
            vmem_limit_bytes=32 * 1024 * 1024),
    )(x, w0, b0, w1, b1, w2, b2)


def init_mlp_readout_params(key, input_dim, output_dim, L=2, dtype=jnp.float32):
    """Deterministic init mimicking nn.Linear default (uniform +/- 1/sqrt(fan_in))."""
    dims = [input_dim // (2 ** l) for l in range(L + 1)] + [output_dim]
    params = []
    for l in range(L + 1):
        fan_in, fan_out = dims[l], dims[l + 1]
        key, kw, kb = jax.random.split(key, 3)
        bound = 1.0 / (fan_in ** 0.5)
        w = jax.random.uniform(kw, (fan_in, fan_out), dtype, -bound, bound)
        b = jax.random.uniform(kb, (1, fan_out), dtype, -bound, bound)
        params.append((w, b))
    return params


def mlp_readout_ref(x, params):
    """Pure-JAX reference matching the PyTorch forward."""
    y = x
    L = len(params) - 1
    for l in range(L):
        w, b = params[l]
        y = jnp.maximum(y @ w + b, 0.0)
    w, b = params[L]
    return y @ w + b


if __name__ == "__main__":
    key = jax.random.PRNGKey(0)
    key, kx1, kx2, kx3 = jax.random.split(key, 4)

    input_dim = 32   # -> hidden dims 16, 8
    output_dim = 4
    L = 2
    params = init_mlp_readout_params(key, input_dim, output_dim, L=L)

    # Case 1: tiny batch -> single full-array block.
    x1 = jax.random.normal(kx1, (8, input_dim), dtype=jnp.float32)
    out1 = jax.block_until_ready(mlp_readout(x1, params))
    ref1 = mlp_readout_ref(x1, params)
    assert out1.shape == (8, output_dim), out1.shape
    assert jnp.allclose(out1, ref1, atol=1e-4, rtol=1e-4), "mismatch (case 1)"

    # Case 2: multi-tile grid with a partial (masked) last block, no x padding.
    x2 = jax.random.normal(kx2, (300, input_dim), dtype=jnp.float32)
    out2 = jax.block_until_ready(mlp_readout(x2, params, tile_n=128))
    ref2 = mlp_readout_ref(x2, params)
    assert out2.shape == (300, output_dim), out2.shape
    assert jnp.allclose(out2, ref2, atol=1e-4, rtol=1e-4), "mismatch (case 2)"

    # Case 3: 2-step grid + in-kernel row sub-chunk loop (256-row tile, 64-row chunks).
    x3 = jax.random.normal(kx3, (512, input_dim), dtype=jnp.float32)
    out3 = jax.block_until_ready(mlp_readout(x3, params, tile_n=256, chunk_rows=64))
    ref3 = mlp_readout_ref(x3, params)
    assert out3.shape == (512, output_dim), out3.shape
    assert jnp.allclose(out3, ref3, atol=1e-4, rtol=1e-4), "mismatch (case 3)"

    print("KERNEL_OK")
</pallas_src>

<mosaic_0001>
module attributes {stable_mosaic.version = 11 : i64} {
  func.func @mlp_readout_kernel(%arg0: i32, %arg1: memref<8x32xf32, #tpu.memory_space<vmem>>, %arg2: memref<32x16xf32, #tpu.memory_space<vmem>>, %arg3: memref<1x16xf32, #tpu.memory_space<vmem>>, %arg4: memref<16x8xf32, #tpu.memory_space<vmem>>, %arg5: memref<1x8xf32, #tpu.memory_space<vmem>>, %arg6: memref<8x4xf32, #tpu.memory_space<vmem>>, %arg7: memref<1x4xf32, #tpu.memory_space<vmem>>, %arg8: memref<8x4xf32, #tpu.memory_space<vmem>>) attributes {dimension_semantics = [#tpu.dimension_semantics<parallel>], iteration_bounds = array<i64: 1>, scalar_prefetch = 0 : i64, scratch_operands = 0 : i64, tpu.core_type = #tpu.core_type<tc>, window_params = [{transform_indices = @transform_0, window_bounds = array<i64: 8, 32>}, {pipeline_mode = #tpu.pipeline_mode<synchronous>, transform_indices = @transform_1, window_bounds = array<i64: 32, 16>}, {pipeline_mode = #tpu.pipeline_mode<synchronous>, transform_indices = @transform_2, window_bounds = array<i64: 1, 16>}, {pipeline_mode = #tpu.pipeline_mode<synchronous>, transform_indices = @transform_3, window_bounds = array<i64: 16, 8>}, {pipeline_mode = #tpu.pipeline_mode<synchronous>, transform_indices = @transform_4, window_bounds = array<i64: 1, 8>}, {pipeline_mode = #tpu.pipeline_mode<synchronous>, transform_indices = @transform_5, window_bounds = array<i64: 8, 4>}, {pipeline_mode = #tpu.pipeline_mode<synchronous>, transform_indices = @transform_6, window_bounds = array<i64: 1, 4>}, {transform_indices = @transform_7, window_bounds = array<i64: 8, 4>}]} {
    %c0 = arith.constant 0 : index
    %c0_0 = arith.constant 0 : index
    %0 = vector.load %arg2[%c0, %c0_0] : memref<32x16xf32, #tpu.memory_space<vmem>>, vector<32x16xf32>
    %c0_1 = arith.constant 0 : index
    %c0_2 = arith.constant 0 : index
    %1 = vector.load %arg4[%c0_1, %c0_2] : memref<16x8xf32, #tpu.memory_space<vmem>>, vector<16x8xf32>
    %c0_3 = arith.constant 0 : index
    %c0_4 = arith.constant 0 : index
    %2 = vector.load %arg6[%c0_3, %c0_4] : memref<8x4xf32, #tpu.memory_space<vmem>>, vector<8x4xf32>
    %c0_5 = arith.constant 0 : index
    %c0_6 = arith.constant 0 : index
    %3 = vector.load %arg3[%c0_5, %c0_6] : memref<1x16xf32, #tpu.memory_space<vmem>>, vector<1x16xf32>
    %c0_7 = arith.constant 0 : index
    %c0_8 = arith.constant 0 : index
    %4 = vector.load %arg5[%c0_7, %c0_8] : memref<1x8xf32, #tpu.memory_space<vmem>>, vector<1x8xf32>
    %c0_9 = arith.constant 0 : index
    %c0_10 = arith.constant 0 : index
    %5 = vector.load %arg7[%c0_9, %c0_10] : memref<1x4xf32, #tpu.memory_space<vmem>>, vector<1x4xf32>
    %c0_11 = arith.constant 0 : index
    %c0_12 = arith.constant 0 : index
    %6 = vector.load %arg1[%c0_11, %c0_12] : memref<8x32xf32, #tpu.memory_space<vmem>>, vector<8x32xf32>
    %cst = arith.constant dense<0.000000e+00> : vector<8x16xf32>
    %7 = tpu.matmul %6, %0, %cst {dimension_numbers = #tpu.dot_dimension_numbers<[1], [0], [0], [1], [0, 0, 1, 1], [], []>} : vector<8x32xf32>, vector<32x16xf32>, vector<8x16xf32> -> vector<8x16xf32>
    %8 = vector.broadcast %3 : vector<1x16xf32> to vector<8x16xf32>
    %9 = arith.addf %7, %8 : vector<8x16xf32>
    %cst_13 = arith.constant 0.000000e+00 : f32
    %10 = vector.broadcast %cst_13 : f32 to vector<8x16xf32>
    %11 = arith.maximumf %9, %10 : vector<8x16xf32>
    %cst_14 = arith.constant dense<0.000000e+00> : vector<8x8xf32>
    %12 = tpu.matmul %11, %1, %cst_14 {dimension_numbers = #tpu.dot_dimension_numbers<[1], [0], [0], [1], [0, 0, 1, 1], [], []>} : vector<8x16xf32>, vector<16x8xf32>, vector<8x8xf32> -> vector<8x8xf32>
    %13 = vector.broadcast %4 : vector<1x8xf32> to vector<8x8xf32>
    %14 = arith.addf %12, %13 : vector<8x8xf32>
    %cst_15 = arith.constant 0.000000e+00 : f32
    %15 = vector.broadcast %cst_15 : f32 to vector<8x8xf32>
    %16 = arith.maximumf %14, %15 : vector<8x8xf32>
    %cst_16 = arith.constant dense<0.000000e+00> : vector<8x4xf32>
    %17 = tpu.matmul %16, %2, %cst_16 {dimension_numbers = #tpu.dot_dimension_numbers<[1], [0], [0], [1], [0, 0, 1, 1], [], []>} : vector<8x8xf32>, vector<8x4xf32>, vector<8x4xf32> -> vector<8x4xf32>
    %18 = vector.broadcast %5 : vector<1x4xf32> to vector<8x4xf32>
    %19 = arith.addf %17, %18 : vector<8x4xf32>
    %c0_17 = arith.constant 0 : index
    %c0_18 = arith.constant 0 : index
    %20 = vector.load %arg8[%c0_17, %c0_18] : memref<8x4xf32, #tpu.memory_space<vmem>>, vector<8x4xf32>
    tpu.vector_store %arg8[%c0_17, %c0_18], %19 {strides = array<i32>} : memref<8x4xf32, #tpu.memory_space<vmem>>, vector<8x4xf32>,
    return
  }
  func.func @transform_0(%arg0: i32) -> (i32, i32) {
    %c0_i32 = arith.constant 0 : i32
    %c0_i32_0 = arith.constant 0 : i32
    return %arg0, %c0_i32 : i32, i32
  }
  func.func @transform_1(%arg0: i32) -> (i32, i32) {
    %c0_i32 = arith.constant 0 : i32
    %c0_i32_0 = arith.constant 0 : i32
    %c0_i32_1 = arith.constant 0 : i32
    return %c0_i32, %c0_i32_0 : i32, i32
  }
  func.func @transform_2(%arg0: i32) -> (i32, i32) {
    %c0_i32 = arith.constant 0 : i32
    %c0_i32_0 = arith.constant 0 : i32
    %c0_i32_1 = arith.constant 0 : i32
    return %c0_i32, %c0_i32_0 : i32, i32
  }
  func.func @transform_3(%arg0: i32) -> (i32, i32) {
    %c0_i32 = arith.constant 0 : i32
    %c0_i32_0 = arith.constant 0 : i32
    %c0_i32_1 = arith.constant 0 : i32
    return %c0_i32, %c0_i32_0 : i32, i32
  }
  func.func @transform_4(%arg0: i32) -> (i32, i32) {
    %c0_i32 = arith.constant 0 : i32
    %c0_i32_0 = arith.constant 0 : i32
    %c0_i32_1 = arith.constant 0 : i32
    return %c0_i32, %c0_i32_0 : i32, i32
  }
  func.func @transform_5(%arg0: i32) -> (i32, i32) {
    %c0_i32 = arith.constant 0 : i32
    %c0_i32_0 = arith.constant 0 : i32
    %c0_i32_1 = arith.constant 0 : i32
    return %c0_i32, %c0_i32_0 : i32, i32
  }
  func.func @transform_6(%arg0: i32) -> (i32, i32) {
    %c0_i32 = arith.constant 0 : i32
    %c0_i32_0 = arith.constant 0 : i32
    %c0_i32_1 = arith.constant 0 : i32
    return %c0_i32, %c0_i32_0 : i32, i32
  }
  func.func @transform_7(%arg0: i32) -> (i32, i32) {
    %c0_i32 = arith.constant 0 : i32
    %c0_i32_0 = arith.constant 0 : i32
    return %arg0, %c0_i32 : i32, i32
  }
}

</mosaic_0001>

<bundles_post_ra>
// kernel: tpu_custom_call.1
= control target key start
LH: loop header
LB: loop body
LE: loop exit
PB: predicated region body
PF: predicated region fallthrough
CT: control target
= control target key end

     0   :  { %v336_v0 = vmov 0.0|0.0   ;;  %vm337_vm0 = vmmov 0   ;;  %v338_v4 = vmov 0.0   ;;  %vm43_vm1 = vcmask 261120   ;;  %s418_s1 = inlined_call_operand.vmem [shape: f32[32,16], index: 1, kind: input, shape index: {}]   ;;  %s419_s0 = inlined_call_operand.vmem [shape: f32[8,32], index: 0, kind: input, shape index: {}]   ;;  %s420_s3 = inlined_call_operand.vmem [shape: f32[16,8], index: 3, kind: input, shape index: {}]   ;;  %s421_s2 = inlined_call_operand.vmem [shape: f32[1,16], index: 2, kind: input, shape index: {}]   ;;  %s422_s5 = inlined_call_operand.vmem [shape: f32[8,4], index: 5, kind: input, shape index: {}]   ;;  %s423_s4 = inlined_call_operand.vmem [shape: f32[1,8], index: 4, kind: input, shape index: {}]   ;;  %s424_s6 = inlined_call_operand.vmem [shape: f32[1,4], index: 6, kind: input, shape index: {}]   ;;  %s425_s7 = inlined_call_operand.vmem [shape: f32[8,4], index: 7, kind: output, shape index: {}]  }
   0x1   :  { %324 = vmatprep.subr.bf16.mxu0 %v336_v0  ;;  %v26_v1 = vld [vmem:[%s418_s1] sm:$0xff]  ;;  %v27_v2 = vld [vmem:[%s418_s1 + $0x8] sm:$0xff]  ;;  %v28_v3 = vld [vmem:[%s418_s1 + $0x10] sm:$0xff]  ;;  %309 = vmatprep.mubr.msk.f32.mxu0 %vm337_vm0, %v338_v4  ;;  %vm124_vm2 = vcmask 130048   ;;  %vm205_vm3 = vcmask 64512   ;;  %vm279_vm4 = vcmask 31744  }
   0x2   :  { %v325_v5 = vpack.c.bf16 %v27_v2, %v26_v1  ;;  %v29_v6 = vld [vmem:[%s418_s1 + $0x18] sm:$0xff]  ;;  %330 = vmatprep.subr.bf16.mxu1 %v336_v0  ;;  %316 = vmatprep.mubr.msk.f32.mxu1 %vm337_vm0, %v338_v4  ;;  %v36_v8 = vld [vmem:[%s419_s0] sm:$0xff]  ;;  %v31_v10 = vld [vmem:[%s420_s3 + $0x8] sm:$0xff] }
   0x3   :  { %v328_v7 = vpack.c.bf16 %v29_v6, %v28_v3  ;;  %v30_v9 = vld [vmem:[%s420_s3] sm:$0xff] }
   0x4   :  { %326 = vmatpush3.bf16.msra.mxu0 %v325_v5  ;;  %v331_v11 = vpack.c.bf16 %v31_v10, %v30_v9  ;;  %v285_v12 = vld [vmem:[%s421_s2] ss:$0 sm:$0xff] }
   0x5   :  { %327 = vmatprep.subr.bf16.mxu0 %v336_v0  ;;  %v32_v17 = vld [vmem:[%s422_s5] sm:$0xff] }
   0x6   :  { %332 = vmatpush3.bf16.msra.mxu1 %v331_v11  ;;  %v287_v18 = vld [vmem:[%s423_s4] ss:$0 sm:$0xff] }
   0x7   :  { %319 = vmatprep.subr.mxu1 %v338_v4  ;;  %v289_v23 = vld [vmem:[%s424_s6] ss:$0 sm:$0xff] }
   0x8   :  { %329 = vmatpush3.bf16.msra.mxu0 %v328_v7 }
   0xb   :  { %310 = vmatmul.mubr.msk.f32.vlgmr.msra.gmra.mrb[0].mxu0 %vm43_vm1, %v36_v8 }
  0xde   :  { %v113_v13 = vpop.f32.mrb[0].mxu0 }
  0xdf   :  { %v114_v14 = vadd.f32 %v285_v12, %v113_v13  ;;  %v311_v15 = vpop.f32.mrb[1].mxu0 }
  0xe1   :  { %v117_v16 = vmax.f32 %v114_v14, 0.0 }
  0xe3   :  { %317 = vmatmul.mubr.msk.f32.vlgmr.msra.gmra.mrb[0].mxu1 %vm124_vm2, %v117_v16 }
  0xe4   :  { %321 = vmatprep.mubr.msk.f32.mxu1 %vm337_vm0, %v338_v4  ;;  %320 = vmatpush3.msra.mxu1 %v32_v17 }
 0x1b6   :  { %v194_v19 = vpop.f32.mrb[0].mxu1 }
 0x1b7   :  { %v195_v20 = vadd.f32 %v287_v18, %v194_v19  ;;  %v318_v21 = vpop.f32.mrb[1].mxu1 }
 0x1b9   :  { %v198_v22 = vmax.f32 %v195_v20, 0.0 }
 0x1bb   :  { %322 = vmatmul.mubr.msk.f32.vlgmr.msra.gmra.mrb[2].mxu1 %vm205_vm3, %v198_v22 }
 0x28e   :  { %v275_v24 = vpop.f32.mrb[2].mxu1 }
 0x28f   :  { %v276_v25 = vadd.f32 %v289_v23, %v275_v24  ;;  %v323_v26 = vpop.f32.mrb[3].mxu1 }
 0x291   :  { %280 = vst.msk [vmem:[%s425_s7] sm:$0xff] %vm279_vm4, %v276_v25 }

</bundles_post_ra>
